<compile_context>
chip_gen: v5e
topology: v5e:2x2
jax: 0.10.0
libtpu: 0.0.40
codegen_flags: <defaults>
</compile_context>

<pallas_src>
import functools

import jax
import jax.numpy as jnp
from jax.experimental import pallas as pl
from jax.experimental.pallas import tpu as pltpu


def _patch_expand_kernel(x_ref, w_ref, g_ref, b_ref, o_ref, *, use_bf16_matmul):
    # x_ref: (TL, C)   w_ref: (2, C, C) with w_ref[i] == W_expand.T[:, i*C:(i+1)*C]
    # g_ref/b_ref: (1, C)   o_ref: (TR, 2, W, C)
    tr, _, W, C = o_ref.shape

    # LayerNorm in f32 (PyTorch: eps=1e-5, biased variance).  One-pass stats:
    # sum(x) and sum(x*x) are independent reductions, so the XLU work overlaps.
    x = x_ref[...].astype(jnp.float32)                              # (TL, C)
    mean = jnp.mean(x, axis=-1, keepdims=True)
    mean_sq = jnp.mean(x * x, axis=-1, keepdims=True)
    var = jnp.maximum(mean_sq - mean * mean, 0.0)
    xn = (x - mean) * jax.lax.rsqrt(var + 1e-5)
    xn = xn * g_ref[0].astype(jnp.float32) + b_ref[0].astype(jnp.float32)

    # Expand matmul on the MXU, split over the two pre-sliced weight halves so
    # the live f32 accumulator is (TL, C) instead of (TL, 2C) and the epilogue
    # has no channel-offset slicing or concat temp.
    op_dtype = jnp.bfloat16 if use_bf16_matmul else w_ref.dtype
    xn_op = xn.astype(op_dtype)
    for i in range(2):
        y = jnp.dot(xn_op, w_ref[i].astype(op_dtype),
                    preferred_element_type=jnp.float32)             # (TL, C)
        # Fused pixel-shuffle write: output sub-row i of spatial row h gets
        # channels [i*C:(i+1)*C] of the expanded tokens of input row h.
        # TODO(synk): for C % 128 != 0 (Swin C=96/192) this store is lane-masked
        # (vst.msk); a padded-C fused path would make it lane-dense.
        o_ref[:, i, :, :] = y.reshape(tr, W, C).astype(o_ref.dtype)


def _step_vmem_bytes(tl, C, x_isz, o_isz, w_isz, weight_bufs=1):
    """Per-grid-step VMEM working set (x/out double-buffered, weight single)."""
    return (2 * tl * C * x_isz                   # x tile, double-buffered
            + 2 * (2 * tl * C) * o_isz           # out tile (tr,2,W,C), double-buffered
            + weight_bufs * (2 * C * C) * w_isz  # pre-split expand weight
            + 4 * tl * C * 4)                    # f32 temporaries (x, xn, dot acc, slack)


def _vmem_budget_bytes():
    """(physical VMEM per core, assumed default scoped limit) — conservative."""
    try:
        info = pltpu.get_tpu_info()
        capacity = int(getattr(info, "vmem_capacity_bytes"))
        # v5e: 16/128 MiB, v6e: 32/128 MiB, v7x: 32/64 MiB.  For 128 MiB chips
        # assume the smaller (v5e) default scoped limit.
        scoped_default = (16 << 20) if capacity >= (100 << 20) else (32 << 20)
        return capacity, scoped_default
    except Exception:
        # Cannot query: assume the smallest physical VMEM (v7x, 64 MiB) and the
        # smallest default scoped limit (v5e, 16 MiB) — safe on every chip.
        return 64 << 20, 16 << 20


def _rows_per_tile(H, W, C, x_isz, o_isz, w_isz, capacity, scoped_default,
                   target_tokens=None):
    """Largest whole-row tile that fits the default scoped VMEM, with >=2 row steps."""
    if target_tokens is None:
        # Bigger tiles amortize the ~0.35us/step overhead; 128 MiB chips (v5e/v6e)
        # take 2K-token tiles easily, keep 64 MiB chips (v7x) at 1K.
        target_tokens = 2048 if capacity >= (100 << 20) else 1024
    divisors = [d for d in range(1, H + 1) if H % d == 0]
    # Require >=2 row steps (software pipelining + megacore on the row axis) and
    # an 8-aligned token count for the (tl, C) input block.
    cands = [d for d in divisors if d < H and (d * W) % 8 == 0]
    if not cands:
        cands = [H]   # tl == L: full-extent block (legal), no row pipelining
    budget = int(scoped_default * 0.75)
    best = None
    for d in sorted(cands):
        if d * W <= target_tokens and _step_vmem_bytes(d * W, C, x_isz, o_isz, w_isz) <= budget:
            best = d
    if best is None:
        # Nothing fits the default scoped limit: take the smallest tile and let
        # the wrapper raise vmem_limit_bytes (capped well below physical VMEM).
        best = min(cands)
    return best


def patch_expand(x, w_expand_t, gamma, beta, input_resolution, *,
                 rows_per_tile=None, use_bf16_matmul=False):
    """x: (B, L, C) channels-last tokens (L = H*W); w_expand_t: (C, 2C).

    Returns (B, 4L, C//2), matching PyTorch PatchExpand.forward, dtype == x.dtype.
    `use_bf16_matmul=True` casts both matmul operands to bf16 (f32 accumulation)
    for the fast MXU path on v5e/v6e when inputs/weights arrive as f32.
    """
    B, L, C = x.shape
    H, W = input_resolution
    assert L == H * W, f"expected L == H*W ({H * W}), got {L}"
    assert C % 2 == 0
    assert gamma.shape == (C,) and beta.shape == (C,)
    assert w_expand_t.shape == (C, 2 * C)

    out_dtype = x.dtype
    x_isz = jnp.dtype(x.dtype).itemsize
    w_isz = jnp.dtype(w_expand_t.dtype).itemsize
    o_isz = jnp.dtype(out_dtype).itemsize

    capacity, scoped_default = _vmem_budget_bytes()
    tr = (rows_per_tile if rows_per_tile is not None else
          _rows_per_tile(H, W, C, x_isz, o_isz, w_isz, capacity, scoped_default))
    assert H % tr == 0
    tl = tr * W
    assert tl % 8 == 0 or tl == L

    # Pre-split weight halves: w_halves[i] == W_expand.T[:, i*C:(i+1)*C].
    # Wrapper-side layout plumbing so each in-kernel dot sees a contiguous,
    # lane-aligned (C, C) operand (no XLU shuffles inside the kernel).
    w_halves = w_expand_t.reshape(C, 2, C).transpose(1, 0, 2)

    # Advisory cost estimate so XLA schedules consumers around the custom call.
    cost = pl.CostEstimate(
        flops=2 * B * L * C * (2 * C),
        transcendentals=B * L,
        bytes_accessed=(x.size * x_isz + w_halves.size * w_isz
                        + 2 * C * 4 + 2 * B * L * C * o_isz),
    )

    step_bytes = _step_vmem_bytes(tl, C, x_isz, o_isz, w_isz)
    cp_kwargs = dict(dimension_semantics=("parallel", "parallel"))
    if step_bytes > int(scoped_default * 0.75):
        # Raise the scoped limit only as far as needed and never above ~75% of
        # the physical per-core VMEM (v7x has only 64 MiB total — headroom for
        # Mosaic's own scratch avoids compile failures / spills there).
        cp_kwargs["vmem_limit_bytes"] = min(
            max(int(step_bytes * 1.5), scoped_default), int(capacity * 3 // 4))

    grid = (B, H // tr)
    kernel = functools.partial(_patch_expand_kernel, use_bf16_matmul=use_bf16_matmul)

    def build(single_buffer_invariants):
        inv_kwargs = (dict(pipeline_mode=pl.Buffered(1))
                      if single_buffer_invariants else {})
        return pl.pallas_call(
            kernel,
            out_shape=jax.ShapeDtypeStruct((B, H, 2, W, C), out_dtype),
            grid_spec=pltpu.PrefetchScalarGridSpec(
                num_scalar_prefetch=0,
                grid=grid,
                in_specs=[
                    pl.BlockSpec((pl.Squeezed(), tl, C), lambda b, r: (b, r, 0)),   # x tile
                    pl.BlockSpec((2, C, C), lambda b, r: (0, 0, 0), **inv_kwargs),  # weight halves
                    pl.BlockSpec((1, C), lambda b, r: (0, 0), **inv_kwargs),        # LN gamma
                    pl.BlockSpec((1, C), lambda b, r: (0, 0), **inv_kwargs),        # LN beta
                ],
                out_specs=pl.BlockSpec((pl.Squeezed(), tr, 2, W, C),
                                       lambda b, r: (b, r, 0, 0, 0)),
            ),
            compiler_params=pltpu.CompilerParams(**cp_kwargs),
            cost_estimate=cost,
        )

    args = (x, w_halves, gamma.reshape(1, C), beta.reshape(1, C))
    try:
        out5 = build(hasattr(pl, "Buffered"))(*args)
    except Exception:
        # Fallback: default (double-buffered) pipelining for the invariant operands.
        out5 = build(False)(*args)

    # (B, H, 2, W, C) -> (B, 2H, 2W, C//2) -> (B, 4L, C//2): pure reshape, no data movement.
    return out5.reshape(B, 4 * L, C // 2)


def _reference(x, w_expand_t, gamma, beta, input_resolution):
    """Pure-JAX reference mirroring the PyTorch forward exactly."""
    B, L, C = x.shape
    H, W = input_resolution
    mean = jnp.mean(x, axis=-1, keepdims=True)
    var = jnp.mean(jnp.square(x - mean), axis=-1, keepdims=True)
    xn = (x - mean) / jnp.sqrt(var + 1e-5) * gamma + beta
    xe = xn @ w_expand_t                                        # (B, L, 2C)
    xe = xe.reshape(B, H, W, 2 * C)
    c2 = C // 2
    x_new = jnp.zeros((B, 2 * H, 2 * W, c2), dtype=xe.dtype)
    for i in range(2):
        for j in range(2):
            k = i * 2 + j
            x_new = x_new.at[:, i::2, j::2, :].set(xe[:, :, :, k * c2:(k + 1) * c2])
    return x_new.reshape(B, 4 * L, c2)


if __name__ == "__main__":
    B, H, W, C = 2, 8, 8, 32
    L = H * W
    key = jax.random.PRNGKey(0)
    kx, kw, kg, kb, kr = jax.random.split(key, 5)

    x = jax.random.normal(kx, (B, L, C), dtype=jnp.float32)
    # nn.Linear(dim, 2*dim, bias=False): weight (2C, C); kernel uses its transpose.
    w_expand = 0.02 * jax.random.normal(kw, (2 * C, C), dtype=jnp.float32)
    w_expand_t = w_expand.T                                     # (C, 2C)
    gamma = 1.0 + 0.1 * jax.random.normal(kg, (C,), dtype=jnp.float32)
    beta = 0.1 * jax.random.normal(kb, (C,), dtype=jnp.float32)
    # Unused-in-forward `reduce` weight (Linear(2C, C//2, bias=False)), kept for parity.
    _w_reduce = 0.02 * jax.random.normal(kr, (C // 2, 2 * C), dtype=jnp.float32)

    out = patch_expand(x, w_expand_t, gamma, beta, (H, W))
    out = jax.block_until_ready(out)

    ref = _reference(x, w_expand_t, gamma, beta, (H, W))
    assert out.shape == (B, 4 * L, C // 2), out.shape
    assert out.dtype == x.dtype, out.dtype
    assert jnp.allclose(out, ref, atol=1e-4, rtol=1e-4), "mismatch vs reference"

    print("KERNEL_OK")
</pallas_src>

<mosaic_0001>
module attributes {stable_mosaic.version = 11 : i64} {
  func.func @_patch_expand_kernel(%arg0: i32, %arg1: i32, %arg2: memref<1x32x32xf32, #tpu.memory_space<vmem>>, %arg3: memref<2x32x32xf32, #tpu.memory_space<vmem>>, %arg4: memref<1x32xf32, #tpu.memory_space<vmem>>, %arg5: memref<1x32xf32, #tpu.memory_space<vmem>>, %arg6: memref<1x4x2x8x32xf32, #tpu.memory_space<vmem>>) attributes {dimension_semantics = [#tpu.dimension_semantics<parallel>, #tpu.dimension_semantics<parallel>], iteration_bounds = array<i64: 2, 2>, scalar_prefetch = 0 : i64, scratch_operands = 0 : i64, tpu.core_type = #tpu.core_type<tc>, window_params = [{transform_indices = @transform_0, window_bounds = array<i64: 1, 32, 32>}, {pipeline_mode = #tpu.pipeline_mode<synchronous>, transform_indices = @transform_1, window_bounds = array<i64: 2, 32, 32>}, {pipeline_mode = #tpu.pipeline_mode<synchronous>, transform_indices = @transform_2, window_bounds = array<i64: 1, 32>}, {pipeline_mode = #tpu.pipeline_mode<synchronous>, transform_indices = @transform_3, window_bounds = array<i64: 1, 32>}, {transform_indices = @transform_4, window_bounds = array<i64: 1, 4, 2, 8, 32>}]} {
    %c0 = arith.constant 0 : index
    %c0_0 = arith.constant 0 : index
    %c0_1 = arith.constant 0 : index
    %0 = vector.load %arg2[%c0, %c0_0, %c0_1] : memref<1x32x32xf32, #tpu.memory_space<vmem>>, vector<1x32x32xf32>
    %1 = vector.shape_cast %0 : vector<1x32x32xf32> to vector<32x32xf32>
    %cst = arith.constant dense<0.000000e+00> : vector<32xf32>
    %2 = vector.multi_reduction <add>, %1, %cst [1] : vector<32x32xf32> to vector<32xf32>
    %3 = vector.shape_cast %2 : vector<32xf32> to vector<32x1xf32>
    %cst_2 = arith.constant 3.200000e+01 : f32
    %4 = vector.broadcast %cst_2 : f32 to vector<32x1xf32>
    %5 = arith.divf %3, %4 : vector<32x1xf32>
    %6 = arith.mulf %1, %1 : vector<32x32xf32>
    %cst_3 = arith.constant dense<0.000000e+00> : vector<32xf32>
    %7 = vector.multi_reduction <add>, %6, %cst_3 [1] : vector<32x32xf32> to vector<32xf32>
    %8 = vector.shape_cast %7 : vector<32xf32> to vector<32x1xf32>
    %cst_4 = arith.constant 3.200000e+01 : f32
    %9 = vector.broadcast %cst_4 : f32 to vector<32x1xf32>
    %10 = arith.divf %8, %9 : vector<32x1xf32>
    %11 = arith.mulf %5, %5 : vector<32x1xf32>
    %12 = arith.subf %10, %11 : vector<32x1xf32>
    %cst_5 = arith.constant 0.000000e+00 : f32
    %13 = vector.broadcast %cst_5 : f32 to vector<32x1xf32>
    %14 = arith.maximumf %12, %13 : vector<32x1xf32>
    %15 = vector.broadcast %5 : vector<32x1xf32> to vector<32x32xf32>
    %16 = arith.subf %1, %15 : vector<32x32xf32>
    %cst_6 = arith.constant 9.99999974E-6 : f32
    %17 = vector.broadcast %cst_6 : f32 to vector<32x1xf32>
    %18 = arith.addf %14, %17 : vector<32x1xf32>
    %19 = math.rsqrt %18 : vector<32x1xf32>
    %20 = vector.broadcast %19 : vector<32x1xf32> to vector<32x32xf32>
    %21 = arith.mulf %16, %20 : vector<32x32xf32>
    %c0_7 = arith.constant 0 : index
    %c0_8 = arith.constant 0 : index
    %22 = vector.load %arg4[%c0_7, %c0_8] : memref<1x32xf32, #tpu.memory_space<vmem>>, vector<1x32xf32>
    %23 = vector.shape_cast %22 : vector<1x32xf32> to vector<32xf32>
    %24 = vector.shape_cast %23 : vector<32xf32> to vector<1x32xf32>
    %25 = vector.broadcast %24 : vector<1x32xf32> to vector<32x32xf32>
    %26 = arith.mulf %21, %25 : vector<32x32xf32>
    %c0_9 = arith.constant 0 : index
    %c0_10 = arith.constant 0 : index
    %27 = vector.load %arg5[%c0_9, %c0_10] : memref<1x32xf32, #tpu.memory_space<vmem>>, vector<1x32xf32>
    %28 = vector.shape_cast %27 : vector<1x32xf32> to vector<32xf32>
    %29 = vector.shape_cast %28 : vector<32xf32> to vector<1x32xf32>
    %30 = vector.broadcast %29 : vector<1x32xf32> to vector<32x32xf32>
    %31 = arith.addf %26, %30 : vector<32x32xf32>
    %c0_11 = arith.constant 0 : index
    %c0_12 = arith.constant 0 : index
    %c0_13 = arith.constant 0 : index
    %32 = vector.load %arg3[%c0_11, %c0_12, %c0_13] : memref<2x32x32xf32, #tpu.memory_space<vmem>>, vector<1x32x32xf32>
    %33 = vector.shape_cast %32 : vector<1x32x32xf32> to vector<32x32xf32>
    %cst_14 = arith.constant dense<0.000000e+00> : vector<32x32xf32>
    %34 = tpu.matmul %31, %33, %cst_14 {dimension_numbers = #tpu.dot_dimension_numbers<[1], [0], [0], [1], [0, 0, 1, 1], [], []>} : vector<32x32xf32>, vector<32x32xf32>, vector<32x32xf32> -> vector<32x32xf32>
    %35 = vector.shape_cast %34 : vector<32x32xf32> to vector<4x8x32xf32>
    %c0_15 = arith.constant 0 : index
    %c0_16 = arith.constant 0 : index
    %c0_17 = arith.constant 0 : index
    %c0_18 = arith.constant 0 : index
    %c0_19 = arith.constant 0 : index
    %36 = vector.load %arg6[%c0_15, %c0_16, %c0_17, %c0_18, %c0_19] : memref<1x4x2x8x32xf32, #tpu.memory_space<vmem>>, vector<1x4x1x8x32xf32>
    %37 = vector.shape_cast %36 : vector<1x4x1x8x32xf32> to vector<4x8x32xf32>
    %38 = vector.shape_cast %35 : vector<4x8x32xf32> to vector<1x4x1x8x32xf32>
    tpu.vector_store %arg6[%c0_15, %c0_16, %c0_17, %c0_18, %c0_19], %38 {strides = array<i32>} : memref<1x4x2x8x32xf32, #tpu.memory_space<vmem>>, vector<1x4x1x8x32xf32>,
    %c1 = arith.constant 1 : index
    %c0_20 = arith.constant 0 : index
    %c0_21 = arith.constant 0 : index
    %39 = vector.load %arg3[%c1, %c0_20, %c0_21] : memref<2x32x32xf32, #tpu.memory_space<vmem>>, vector<1x32x32xf32>
    %40 = vector.shape_cast %39 : vector<1x32x32xf32> to vector<32x32xf32>
    %cst_22 = arith.constant dense<0.000000e+00> : vector<32x32xf32>
    %41 = tpu.matmul %31, %40, %cst_22 {dimension_numbers = #tpu.dot_dimension_numbers<[1], [0], [0], [1], [0, 0, 1, 1], [], []>} : vector<32x32xf32>, vector<32x32xf32>, vector<32x32xf32> -> vector<32x32xf32>
    %42 = vector.shape_cast %41 : vector<32x32xf32> to vector<4x8x32xf32>
    %c0_23 = arith.constant 0 : index
    %c0_24 = arith.constant 0 : index
    %c1_25 = arith.constant 1 : index
    %c0_26 = arith.constant 0 : index
    %c0_27 = arith.constant 0 : index
    %43 = vector.load %arg6[%c0_23, %c0_24, %c1_25, %c0_26, %c0_27] : memref<1x4x2x8x32xf32, #tpu.memory_space<vmem>>, vector<1x4x1x8x32xf32>
    %44 = vector.shape_cast %43 : vector<1x4x1x8x32xf32> to vector<4x8x32xf32>
    %45 = vector.shape_cast %42 : vector<4x8x32xf32> to vector<1x4x1x8x32xf32>
    tpu.vector_store %arg6[%c0_23, %c0_24, %c1_25, %c0_26, %c0_27], %45 {strides = array<i32>} : memref<1x4x2x8x32xf32, #tpu.memory_space<vmem>>, vector<1x4x1x8x32xf32>,
    return
  }
  func.func @transform_0(%arg0: i32, %arg1: i32) -> (i32, i32, i32) {
    %c0_i32 = arith.constant 0 : i32
    %c0_i32_0 = arith.constant 0 : i32
    return %arg0, %arg1, %c0_i32 : i32, i32, i32
  }
  func.func @transform_1(%arg0: i32, %arg1: i32) -> (i32, i32, i32) {
    %c0_i32 = arith.constant 0 : i32
    %c0_i32_0 = arith.constant 0 : i32
    %c0_i32_1 = arith.constant 0 : i32
    %c0_i32_2 = arith.constant 0 : i32
    return %c0_i32, %c0_i32_0, %c0_i32_1 : i32, i32, i32
  }
  func.func @transform_2(%arg0: i32, %arg1: i32) -> (i32, i32) {
    %c0_i32 = arith.constant 0 : i32
    %c0_i32_0 = arith.constant 0 : i32
    %c0_i32_1 = arith.constant 0 : i32
    return %c0_i32, %c0_i32_0 : i32, i32
  }
  func.func @transform_3(%arg0: i32, %arg1: i32) -> (i32, i32) {
    %c0_i32 = arith.constant 0 : i32
    %c0_i32_0 = arith.constant 0 : i32
    %c0_i32_1 = arith.constant 0 : i32
    return %c0_i32, %c0_i32_0 : i32, i32
  }
  func.func @transform_4(%arg0: i32, %arg1: i32) -> (i32, i32, i32, i32, i32) {
    %c0_i32 = arith.constant 0 : i32
    %c0_i32_0 = arith.constant 0 : i32
    %c0_i32_1 = arith.constant 0 : i32
    %c0_i32_2 = arith.constant 0 : i32
    return %arg0, %arg1, %c0_i32, %c0_i32_0, %c0_i32_1 : i32, i32, i32, i32, i32
  }
}

module attributes {stable_mosaic.version = 11 : i64} {
  func.func @_patch_expand_kernel(%arg0: i32, %arg1: i32, %arg2: memref<1x32x32xf32, #tpu.memory_space<vmem>>, %arg3: memref<2x32x32xf32, #tpu.memory_space<vmem>>, %arg4: memref<1x32xf32, #tpu.memory_space<vmem>>, %arg5: memref<1x32xf32, #tpu.memory_space<vmem>>, %arg6: memref<1x4x2x8x32xf32, #tpu.memory_space<vmem>>) attributes {dimension_semantics = [#tpu.dimension_semantics<parallel>, #tpu.dimension_semantics<parallel>], iteration_bounds = array<i64: 2, 2>, scalar_prefetch = 0 : i64, scratch_operands = 0 : i64, tpu.core_type = #tpu.core_type<tc>, window_params = [{transform_indices = @transform_0, window_bounds = array<i64: 1, 32, 32>}, {pipeline_mode = #tpu.pipeline_mode<synchronous>, transform_indices = @transform_1, window_bounds = array<i64: 2, 32, 32>}, {pipeline_mode = #tpu.pipeline_mode<synchronous>, transform_indices = @transform_2, window_bounds = array<i64: 1, 32>}, {pipeline_mode = #tpu.pipeline_mode<synchronous>, transform_indices = @transform_3, window_bounds = array<i64: 1, 32>}, {transform_indices = @transform_4, window_bounds = array<i64: 1, 4, 2, 8, 32>}]} {
    %c0 = arith.constant 0 : index
    %c0_0 = arith.constant 0 : index
    %c0_1 = arith.constant 0 : index
    %0 = vector.load %arg2[%c0, %c0_0, %c0_1] : memref<1x32x32xf32, #tpu.memory_space<vmem>>, vector<1x32x32xf32>
    %1 = vector.shape_cast %0 : vector<1x32x32xf32> to vector<32x32xf32>
    %cst = arith.constant dense<0.000000e+00> : vector<32xf32>
    %2 = vector.multi_reduction <add>, %1, %cst [1] : vector<32x32xf32> to vector<32xf32>
    %3 = vector.shape_cast %2 : vector<32xf32> to vector<32x1xf32>
    %cst_2 = arith.constant 3.200000e+01 : f32
    %4 = vector.broadcast %cst_2 : f32 to vector<32x1xf32>
    %5 = arith.divf %3, %4 : vector<32x1xf32>
    %6 = arith.mulf %1, %1 : vector<32x32xf32>
    %cst_3 = arith.constant dense<0.000000e+00> : vector<32xf32>
    %7 = vector.multi_reduction <add>, %6, %cst_3 [1] : vector<32x32xf32> to vector<32xf32>
    %8 = vector.shape_cast %7 : vector<32xf32> to vector<32x1xf32>
    %cst_4 = arith.constant 3.200000e+01 : f32
    %9 = vector.broadcast %cst_4 : f32 to vector<32x1xf32>
    %10 = arith.divf %8, %9 : vector<32x1xf32>
    %11 = arith.mulf %5, %5 : vector<32x1xf32>
    %12 = arith.subf %10, %11 : vector<32x1xf32>
    %cst_5 = arith.constant 0.000000e+00 : f32
    %13 = vector.broadcast %cst_5 : f32 to vector<32x1xf32>
    %14 = arith.maximumf %12, %13 : vector<32x1xf32>
    %15 = vector.broadcast %5 : vector<32x1xf32> to vector<32x32xf32>
    %16 = arith.subf %1, %15 : vector<32x32xf32>
    %cst_6 = arith.constant 9.99999974E-6 : f32
    %17 = vector.broadcast %cst_6 : f32 to vector<32x1xf32>
    %18 = arith.addf %14, %17 : vector<32x1xf32>
    %19 = math.rsqrt %18 : vector<32x1xf32>
    %20 = vector.broadcast %19 : vector<32x1xf32> to vector<32x32xf32>
    %21 = arith.mulf %16, %20 : vector<32x32xf32>
    %c0_7 = arith.constant 0 : index
    %c0_8 = arith.constant 0 : index
    %22 = vector.load %arg4[%c0_7, %c0_8] : memref<1x32xf32, #tpu.memory_space<vmem>>, vector<1x32xf32>
    %23 = vector.shape_cast %22 : vector<1x32xf32> to vector<32xf32>
    %24 = vector.shape_cast %23 : vector<32xf32> to vector<1x32xf32>
    %25 = vector.broadcast %24 : vector<1x32xf32> to vector<32x32xf32>
    %26 = arith.mulf %21, %25 : vector<32x32xf32>
    %c0_9 = arith.constant 0 : index
    %c0_10 = arith.constant 0 : index
    %27 = vector.load %arg5[%c0_9, %c0_10] : memref<1x32xf32, #tpu.memory_space<vmem>>, vector<1x32xf32>
    %28 = vector.shape_cast %27 : vector<1x32xf32> to vector<32xf32>
    %29 = vector.shape_cast %28 : vector<32xf32> to vector<1x32xf32>
    %30 = vector.broadcast %29 : vector<1x32xf32> to vector<32x32xf32>
    %31 = arith.addf %26, %30 : vector<32x32xf32>
    %c0_11 = arith.constant 0 : index
    %c0_12 = arith.constant 0 : index
    %c0_13 = arith.constant 0 : index
    %32 = vector.load %arg3[%c0_11, %c0_12, %c0_13] : memref<2x32x32xf32, #tpu.memory_space<vmem>>, vector<1x32x32xf32>
    %33 = vector.shape_cast %32 : vector<1x32x32xf32> to vector<32x32xf32>
    %cst_14 = arith.constant dense<0.000000e+00> : vector<32x32xf32>
    %34 = tpu.matmul %31, %33, %cst_14 {dimension_numbers = #tpu.dot_dimension_numbers<[1], [0], [0], [1], [0, 0, 1, 1], [], []>} : vector<32x32xf32>, vector<32x32xf32>, vector<32x32xf32> -> vector<32x32xf32>
    %35 = vector.shape_cast %34 : vector<32x32xf32> to vector<4x8x32xf32>
    %c0_15 = arith.constant 0 : index
    %c0_16 = arith.constant 0 : index
    %c0_17 = arith.constant 0 : index
    %c0_18 = arith.constant 0 : index
    %c0_19 = arith.constant 0 : index
    %36 = vector.load %arg6[%c0_15, %c0_16, %c0_17, %c0_18, %c0_19] : memref<1x4x2x8x32xf32, #tpu.memory_space<vmem>>, vector<1x4x1x8x32xf32>
    %37 = vector.shape_cast %36 : vector<1x4x1x8x32xf32> to vector<4x8x32xf32>
    %38 = vector.shape_cast %35 : vector<4x8x32xf32> to vector<1x4x1x8x32xf32>
    tpu.vector_store %arg6[%c0_15, %c0_16, %c0_17, %c0_18, %c0_19], %38 {strides = array<i32>} : memref<1x4x2x8x32xf32, #tpu.memory_space<vmem>>, vector<1x4x1x8x32xf32>,
    %c1 = arith.constant 1 : index
    %c0_20 = arith.constant 0 : index
    %c0_21 = arith.constant 0 : index
    %39 = vector.load %arg3[%c1, %c0_20, %c0_21] : memref<2x32x32xf32, #tpu.memory_space<vmem>>, vector<1x32x32xf32>
    %40 = vector.shape_cast %39 : vector<1x32x32xf32> to vector<32x32xf32>
    %cst_22 = arith.constant dense<0.000000e+00> : vector<32x32xf32>
    %41 = tpu.matmul %31, %40, %cst_22 {dimension_numbers = #tpu.dot_dimension_numbers<[1], [0], [0], [1], [0, 0, 1, 1], [], []>} : vector<32x32xf32>, vector<32x32xf32>, vector<32x32xf32> -> vector<32x32xf32>
    %42 = vector.shape_cast %41 : vector<32x32xf32> to vector<4x8x32xf32>
    %c0_23 = arith.constant 0 : index
    %c0_24 = arith.constant 0 : index
    %c1_25 = arith.constant 1 : index
    %c0_26 = arith.constant 0 : index
    %c0_27 = arith.constant 0 : index
    %43 = vector.load %arg6[%c0_23, %c0_24, %c1_25, %c0_26, %c0_27] : memref<1x4x2x8x32xf32, #tpu.memory_space<vmem>>, vector<1x4x1x8x32xf32>
    %44 = vector.shape_cast %43 : vector<1x4x1x8x32xf32> to vector<4x8x32xf32>
    %45 = vector.shape_cast %42 : vector<4x8x32xf32> to vector<1x4x1x8x32xf32>
    tpu.vector_store %arg6[%c0_23, %c0_24, %c1_25, %c0_26, %c0_27], %45 {strides = array<i32>} : memref<1x4x2x8x32xf32, #tpu.memory_space<vmem>>, vector<1x4x1x8x32xf32>,
    return
  }
  func.func @transform_0(%arg0: i32, %arg1: i32) -> (i32, i32, i32) {
    %c0_i32 = arith.constant 0 : i32
    %c0_i32_0 = arith.constant 0 : i32
    return %arg0, %arg1, %c0_i32 : i32, i32, i32
  }
  func.func @transform_1(%arg0: i32, %arg1: i32) -> (i32, i32, i32) {
    %c0_i32 = arith.constant 0 : i32
    %c0_i32_0 = arith.constant 0 : i32
    %c0_i32_1 = arith.constant 0 : i32
    %c0_i32_2 = arith.constant 0 : i32
    return %c0_i32, %c0_i32_0, %c0_i32_1 : i32, i32, i32
  }
  func.func @transform_2(%arg0: i32, %arg1: i32) -> (i32, i32) {
    %c0_i32 = arith.constant 0 : i32
    %c0_i32_0 = arith.constant 0 : i32
    %c0_i32_1 = arith.constant 0 : i32
    return %c0_i32, %c0_i32_0 : i32, i32
  }
  func.func @transform_3(%arg0: i32, %arg1: i32) -> (i32, i32) {
    %c0_i32 = arith.constant 0 : i32
    %c0_i32_0 = arith.constant 0 : i32
    %c0_i32_1 = arith.constant 0 : i32
    return %c0_i32, %c0_i32_0 : i32, i32
  }
  func.func @transform_4(%arg0: i32, %arg1: i32) -> (i32, i32, i32, i32, i32) {
    %c0_i32 = arith.constant 0 : i32
    %c0_i32_0 = arith.constant 0 : i32
    %c0_i32_1 = arith.constant 0 : i32
    %c0_i32_2 = arith.constant 0 : i32
    return %arg0, %arg1, %c0_i32, %c0_i32_0, %c0_i32_1 : i32, i32, i32, i32, i32
  }
}

</mosaic_0001>

<bundles_post_ra>
// kernel: tpu_custom_call.1
= control target key start
LH: loop header
LB: loop body
LE: loop exit
PB: predicated region body
PF: predicated region fallthrough
CT: control target
= control target key end

     0   :  { %9 = vsyncpa [#allocation3], 0  ;;  %s1014_s0 = inlined_call_operand.vmem [shape: f32[2,64,32], index: 0, kind: input, shape index: {}]   ;;  %s1015_s1 = inlined_call_operand.vmem [shape: f32[2,32,32], index: 1, kind: input, shape index: {}]   ;;  %s1016_s2 = inlined_call_operand.vmem [shape: f32[1,32], index: 2, kind: input, shape index: {}]   ;;  %s1017_s3 = inlined_call_operand.vmem [shape: f32[1,32], index: 3, kind: input, shape index: {}]   ;;  %s1018_s4 = inlined_call_operand.hbm [shape: f32[2,8,2,8,32], index: 4, kind: output, shape index: {}]  }
   0x1   :  { %11 = vsyncpa [#allocation3 + $0x1], 0  ;;  %s795_s15 = smov 0   ;;  %s797_s16 = smov 0  }
   0x2   :  { %s799_s17 = smov 0   ;;  %s801_s18 = smov 0  }
   0x3   :  { %s803_s19 = smov 0   ;;  %s805_s20 = smov 0  }
   0x4   :  { %s807_s21 = smov 0   ;;  %s809_s22 = smov 0  }
   0x5 LB: > { %s544_s23 = sadd.s32 4294967295, %s765_s22   ;;  %s545_s24 = sadd.s32 4294967294, %s765_s22   ;;  %s765_s22 = sphi %s809_s22, %s17_s22   ;;  %s761_s21 = sphi %s807_s21, %s1027_s21   ;;  %s757_s20 = sphi %s805_s20, %s1026_s20   ;;  %s753_s19 = sphi %s803_s19, %s1025_s19   ;;  %s749_s18 = sphi %s801_s18, %s1024_s18   ;;  %s745_s17 = sphi %s799_s17, %s1023_s17   ;;  %s741_s16 = sphi %s797_s16, %s1022_s16   ;;  %s737_s15 = sphi %s795_s15, %s1021_s15  }
   0x6   : > { %s26_s25 = sadd.s32 1, %s757_s20  ;;  %s29_s26 = sadd.s32 1, %s761_s21 }
   0x7   : > { %p27_p0 = scmp.ge.s32.totalorder %s26_s25, 2  ;;  %p139_p1 = scmp.ne.s32.totalorder %s745_s17, %s741_s16 }
   0x8   : > { %p140_p2 = scmp.eq.s32.totalorder %s544_s23, 3  ;;  %p145_p5 = scmp.ne.s32.totalorder %s741_s16, %s737_s15 }
   0x9   : > { %s1029_s25 = smov (%p27_p0, %s26_s25), 0  ;;  %s1031_s26 = smov (!%p27_p0, %s29_s26), %s761_s21 }
   0xa   : > { %s125_s27 = ssub.s32 %s757_s20, %s1029_s25  ;;  %p846_p3 = por %p140_p2, %p139_p1 }
   0xb   : > { %p31_p4 = scmp.ge.s32.totalorder %s1031_s26, 2  ;;  %p146_p6 = scmp.eq.s32.totalorder %s545_s24, 3 }
   0xc   : > { %p548_p7 = scmp.ge.s32.totalorder %s765_s22, 1  ;;  %p186_p9 = scmp.lt.s32.totalorder %s765_s22, 5 }
   0xd   : > { %s1033_s26 = smov (%p31_p4, %s1031_s26), 0  ;;  %p855_p8 = por %p146_p6, %p145_p5 }
   0xe   : > { %s124_s30 = ssub.s32 %s761_s21, %s1033_s26  ;;  %s129_s5 = sadd.s32 1, %s745_s17 }
   0xf   : > { %s126_s6 = sor.u32 %s125_s27, %s124_s30  ;;  %p187_p10 = pnand %p548_p7, %p186_p9 }
  0x10   : > { %p127_p11 = scmp.eq.s32.totalorder %s126_s6, 0  ;;  %s550_s8 = sshll.u32 (!%p187_p10), %s749_s18, 2 }
  0x11   : > { %190 = sbr.rel (%p187_p10) target bundleno = 331 (0x14b), region = 36  ;;  %p217_p12 = scmp.lt.s32.totalorder (!%p187_p10), %s753_s19, 1 }
  0x12   : > { %s864_s7 = scalar_select %p127_p11, %s745_s17, %s129_s5  }
  0x13   : > { %p219_p13 = scmp.lt.s32.totalorder (!%p187_p10), %s550_s8, 7  ;;  %s576_s13 = sshll.u32 (!%p187_p10), %s749_s18, 3 }
  0x14   : > { %s572_s14 = sshll.u32 (!%p187_p10), %s753_s19, 4 }
  0x16   : > { %s218_s9 = scalar_select %p217_p12, %s753_s19, 1  ;;  %vm231_vm0 = vcmask 261120   ;;  %v767_v16 = vmov 32.0   ;;  %v358_v22 = vld [vmem:[%s1015_s1 + $0x18] sm:$0xff]  ;;  %v357_v25 = vld [vmem:[%s1015_s1 + $0x10] sm:$0xff]  ;;  %v356_v29 = vld [vmem:[%s1015_s1 + $0x8] sm:$0xff] }
  0x17   : > { %s1035_s8 = smov (!%p219_p13, %s550_s8), 7  ;;  %661 = vrcp.f32 %v767_v16  ;;  %v560_v23 = vld [vmem:[%s1015_s1 + $0x38] sm:$0xff]  ;;  %383 = vmatpush.msra.mxu0 %v358_v22  ;;  %v559_v26 = vld [vmem:[%s1015_s1 + $0x30] sm:$0xff]  ;;  %577 = vmatpush.msra.mxu2 %v358_v22  ;;  %v558_v30 = vld [vmem:[%s1015_s1 + $0x28] sm:$0xff] }
  0x18   : > { %s551_s10 = sshll.u32 %s218_s9, 3  ;;  %421 = vmatpush.msra.mxu1 %v560_v23  ;;  %581 = vmatpush.msra.mxu3 %v560_v23  ;;  %v355_v33 = vld [vmem:[%s1015_s1] sm:$0xff] }
  0x19   : > { %s222_s11 = sadd.s32 %s551_s10, %s1035_s8  ;;  %384 = vmatpush.msra.mxu0 %v357_v25  ;;  %578 = vmatpush.msra.mxu2 %v357_v25  ;;  %v557_v34 = vld [vmem:[%s1015_s1 + $0x20] sm:$0xff]  ;;  %s213_s10 = sand.u32 1, %s741_s16  }
  0x1a   : > { %s552_s12 = sshll.u32 %s222_s11, 3  ;;  %422 = vmatpush.msra.mxu1 %v559_v26  ;;  %582 = vmatpush.msra.mxu3 %v559_v26  ;;  %v660_v22 = vld [vmem:[%s1017_s3] ss:$0 sm:$0xff]  ;;  %s549_s11 = sshll.u32 %s213_s10, 6 }
  0x1b   : > { %s224_s23 = scalar_lea.vmem %s1014_s0, %s552_s12  ;;  %385 = vmatpush.msra.mxu0 %v356_v29  ;;  %579 = vmatpush.msra.mxu2 %v356_v29  ;;  %s215_s12 = scalar_lea.vmem [#allocation2], %s549_s11 }
  0x1c   : > { %v872_v0 = vld [vmem:[%s224_s23 + $0x10] sm:$0xff]  ;;  %v874_v1 = vld [vmem:[%s224_s23] sm:$0xff]  ;;  %v882_v5 = vld [vmem:[%s224_s23 + $0x18] sm:$0xff]  ;;  %423 = vmatpush.msra.mxu1 %v558_v30  ;;  %583 = vmatpush.msra.mxu3 %v558_v30  ;;  %s459_s6 = sshll.u32 %s215_s12, 4  ;;  %s444_s18 = scalar_lea.sflag [#allocation3], %s213_s10  ;;  %s460_s6 = int_to_ptr.vmem [resolvable:$true] %s459_s6 }
  0x1d   : > { %v238_v2 = vsel %vm231_vm0, %v872_v0, 0.0  ;;  %v232_v3 = vsel %vm231_vm0, %v874_v1, 0.0  ;;  %v255_v4 = vmul.f32 %v874_v1, %v874_v1  ;;  %v257_v7 = vmul.f32 %v872_v0, %v872_v0  ;;  %v892_v11 = vld [vmem:[%s224_s23 + $0x8] sm:$0xff]  ;;  %v662_v17 = vpop.eup %661  ;;  %386 = vmatpush.msra.mxu0 %v355_v33  ;;  %580 = vmatpush.msra.mxu2 %v355_v33  ;;  %s456_s23 = sadd.s32 %s576_s13, %s572_s14  ;;  %s691_s14 = scalar_lea.hbm %s1018_s4, 256 }
  0x1e   : > { %239 = vadd.xlane.f32.xlu0 %v238_v2  ;;  %233 = vadd.xlane.f32.xlu1 %v232_v3  ;;  %v258_v8 = vmul.f32 %v882_v5, %v882_v5  ;;  %v241_v10 = vsel %vm231_vm0, %v882_v5, 0.0  ;;  %v256_v13 = vmul.f32 %v892_v11, %v892_v11  ;;  %v235_v14 = vsel %vm231_vm0, %v892_v11, 0.0  ;;  %s573_s24 = sshll.u32 %s456_s23, 3 }
  0x1f   : > { %v259_v6 = vsel %vm231_vm0, %v255_v4, 0.0  ;;  %v265_v9 = vsel %vm231_vm0, %v257_v7, 0.0  ;;  %v245_v18 = vmul.f32 32.0, %v662_v17  ;;  %vm249_vm1 = vweird.f32 %v662_v17  ;;  %424 = vmatpush.msra.mxu1 %v557_v34  ;;  %584 = vmatpush.msra.mxu3 %v557_v34  ;;  %s458_s5 = scalar_lea.hbm %s1018_s4, %s573_s24 }
  0x20   : > { %260 = vadd.xlane.f32.xlu2 %v259_v6  ;;  %v268_v12 = vsel %vm231_vm0, %v258_v8, 0.0  ;;  %v262_v15 = vsel %vm231_vm0, %v256_v13, 0.0  ;;  %s461_s8 = sshll.u32 %s458_s5, 4  ;;  %s462_s8 = int_to_ptr.hbm [resolvable:$true] %s461_s8 }
  0x21   : > { %v246_v19 = vsub.f32 1.0, %v245_v18  ;;  %s685_s19 = sshra.s32 %s462_s8, 4  ;;  %s686_s19 = int_to_ptr.hbm [resolvable:$true] %s685_s19 }
  0x22   : > { %s687_s9 = scalar_lea.hbm %s686_s19, 64  ;;  %p692_p4 = scmp.lt.s32.totalorder %s686_s19, %s1018_s4 }
  0x23   : > { %v247_v20 = vmul.f32 %v662_v17, %v246_v19  ;;  %p688_p0 = scmp.ne.s32.totalorder %s686_s19, %s687_s9  ;;  %p693_p5 = scmp.lt.s32.totalorder %s691_s14, %s687_s9 }
  0x25   : > { %v248_v21 = vadd.f32 %v662_v17, %v247_v20  ;;  %p689_p1 = pnand %p688_p0, %p846_p3  ;;  %p694_p6 = por %p693_p5, %p692_p4 }
  0x26   : > { %266 = vadd.xlane.f32.xlu0 %v265_v9  ;;  %242 = vadd.xlane.f32.xlu1 %v241_v10 }
  0x27   : > { %v250_v24 = vsel %vm249_vm1, %v662_v17, %v248_v21  ;;  %v659_v17 = vld [vmem:[%s1016_s2] ss:$0 sm:$0xff]  ;;  %p690_p2 = pneg %p689_p1 }
  0x28   : > { %269 = vadd.xlane.f32.xlu2 %v268_v12 }
  0x29   : > { %p695_p7 = pnand %p694_p6, %p690_p2 }
  0x2e   : > { %236 = vadd.xlane.f32.xlu0 %v235_v14  ;;  %263 = vadd.xlane.f32.xlu1 %v262_v15 }
  0x91   : > { %v240_v27 = vpop.xlane.xlu0 %239  ;;  %v234_v28 = vpop.xlane.xlu1 %233 }
  0x92   : > { %v918_v31 = vmul.f32 %v250_v24, %v234_v28  ;;  %v928_v37 = vmul.f32 %v250_v24, %v240_v27 }
  0x93   : > { %v261_v32 = vpop.xlane.xlu2 %260 }
  0x94   : > { %v275_v35 = vmul.f32 %v918_v31, %v918_v31  ;;  %v271_v36 = vmul.f32 %v261_v32, %v250_v24  ;;  %v277_v42 = vmul.f32 %v928_v37, %v928_v37  ;;  %v287_v14 = vsub.f32 %v874_v1, %v918_v31 }
  0x95   : > { %v289_v25 = vsub.f32 %v872_v0, %v928_v37 }
  0x96   : > { %v279_v38 = vsub.f32 %v271_v36, %v275_v35 }
  0x98   : > { %v283_v39 = vmax.f32 %v279_v38, 0.0 }
  0x99   : > { %v267_v40 = vpop.xlane.xlu0 %266  ;;  %v243_v41 = vpop.xlane.xlu1 %242 }
  0x9a   : > { %v273_v43 = vmul.f32 %v267_v40, %v250_v24  ;;  %v932_v44 = vmul.f32 %v250_v24, %v243_v41  ;;  %v291_v45 = vadd.f32 1e-05, %v283_v39 }
  0x9b   : > { %v270_v46 = vpop.xlane.xlu2 %269 }
  0x9c   : > { %v281_v47 = vsub.f32 %v273_v43, %v277_v42  ;;  %v278_v48 = vmul.f32 %v932_v44, %v932_v44  ;;  %v274_v49 = vmul.f32 %v270_v46, %v250_v24  ;;  %663 = vrsqrt.f32 %v291_v45 }
  0x9d   : > { %vm301_vm2 = vweird.f32 %v291_v45  ;;  %v290_v33 = vsub.f32 %v882_v5, %v932_v44 }
  0x9e   : > { %v285_v50 = vmax.f32 %v281_v47, 0.0  ;;  %v282_v51 = vsub.f32 %v274_v49, %v278_v48 }
  0xa0   : > { %v293_v52 = vadd.f32 1e-05, %v285_v50  ;;  %v286_v53 = vmax.f32 %v282_v51, 0.0 }
  0xa1   : > { %v237_v54 = vpop.xlane.xlu0 %236  ;;  %v264_v55 = vpop.xlane.xlu1 %263 }
  0xa2   : > { %665 = vrsqrt.f32 %v293_v52  ;;  %v294_v56 = vadd.f32 1e-05, %v286_v53  ;;  %v936_v57 = vmul.f32 %v250_v24, %v237_v54  ;;  %v664_v58 = vpop.eup %663  ;;  %v272_v59 = vmul.f32 %v264_v55, %v250_v24 }
  0xa3   : > { %v296_v60 = vmul.f32 %v664_v58, %v291_v45  ;;  %vm302_vm3 = vweird.f32 %v664_v58  ;;  %vm321_vm6 = vweird.f32 %v293_v52 }
  0xa4   : > { %667 = vrsqrt.f32 %v294_v56  ;;  %v276_v61 = vmul.f32 %v936_v57, %v936_v57  ;;  %vm303_vm4 = vmor %vm301_vm2, %vm302_vm3  ;;  %vm331_vm7 = vweird.f32 %v294_v56  ;;  %v288_v41 = vsub.f32 %v892_v11, %v936_v57 }
  0xa5   : > { %v297_v62 = vmul.f32 %v664_v58, %v296_v60 }
  0xa6   : > { %v280_v63 = vsub.f32 %v272_v59, %v276_v61 }
  0xa7   : > { %v298_v3 = vmul.f32 0.5, %v297_v62 }
  0xa8   : > { %v666_v2 = vpop.eup %665  ;;  %v284_v6 = vmax.f32 %v280_v63, 0.0 }
  0xa9   : > { %v316_v4 = vmul.f32 %v666_v2, %v293_v52  ;;  %v299_v8 = vsub.f32 1.5, %v298_v3  ;;  %vm322_vm5 = vweird.f32 %v666_v2 }
  0xaa   : > { %v668_v7 = vpop.eup %667  ;;  %v292_v12 = vadd.f32 1e-05, %v284_v6  ;;  %vm323_vm9 = vmor %vm321_vm6, %vm322_vm5 }
  0xab   : > { %v317_v9 = vmul.f32 %v666_v2, %v316_v4  ;;  %v326_v10 = vmul.f32 %v668_v7, %v294_v56  ;;  %v300_v13 = vmul.f32 %v664_v58, %v299_v8  ;;  %vm332_vm8 = vweird.f32 %v668_v7 }
  0xac   : > { %669 = vrsqrt.f32 %v292_v12  ;;  %vm333_vm10 = vmor %vm331_vm7, %vm332_vm8  ;;  %vm311_vm12 = vweird.f32 %v292_v12 }
  0xad   : > { %v318_v15 = vmul.f32 0.5, %v317_v9  ;;  %v327_v16 = vmul.f32 %v668_v7, %v326_v10  ;;  %v304_v18 = vsel %vm303_vm4, %v664_v58, %v300_v13 }
  0xae   : > { %v335_v21 = vmul.f32 %v304_v18, %v287_v14 }
  0xaf   : > { %v319_v19 = vsub.f32 1.5, %v318_v15  ;;  %v328_v20 = vmul.f32 0.5, %v327_v16 }
  0xb0   : > { %v343_v24 = vmul.f32 %v659_v17, %v335_v21 }
  0xb1   : > { %v320_v1 = vmul.f32 %v666_v2, %v319_v19  ;;  %v329_v23 = vsub.f32 1.5, %v328_v20 }
  0xb2   : > { %v670_v26 = vpop.eup %669  ;;  %v351_v28 = vadd.f32 %v660_v22, %v343_v24 }
  0xb3   : > { %v330_v27 = vmul.f32 %v668_v7, %v329_v23  ;;  %v324_v29 = vsel %vm323_vm9, %v666_v2, %v320_v1  ;;  %v306_v30 = vmul.f32 %v670_v26, %v292_v12  ;;  %vm312_vm11 = vweird.f32 %v670_v26 }
  0xb4   : > { %v337_v31 = vmul.f32 %v324_v29, %v289_v25  ;;  %553 = vmatmul.msk.f32.vlgmr.msra.gmra.mxu0 %vm231_vm0, %v351_v28  ;;  %561 = vmatmul.msk.f32.vlgmr.msra.gmra.mxu1 %vm231_vm0, %v351_v28  ;;  %vm313_vm13 = vmor %vm311_vm12, %vm312_vm11 }
  0xb5   : > { %v334_v32 = vsel %vm333_vm10, %v668_v7, %v330_v27  ;;  %v307_v34 = vmul.f32 %v670_v26, %v306_v30 }
  0xb6   : > { %v345_v35 = vmul.f32 %v659_v17, %v337_v31  ;;  %v338_v37 = vmul.f32 %v334_v32, %v290_v33 }
  0xb7   : > { %v308_v36 = vmul.f32 0.5, %v307_v34 }
  0xb8   : > { %v353_v0 = vadd.f32 %v660_v22, %v345_v35  ;;  %v346_v40 = vmul.f32 %v659_v17, %v338_v37 }
  0xb9   : > { %v309_v38 = vsub.f32 1.5, %v308_v36 }
  0xba   : > { %555 = vmatmul.msk.f32.vlgmr.msra.gmra.mxu2 %vm231_vm0, %v353_v0  ;;  %563 = vmatmul.msk.f32.vlgmr.msra.gmra.mxu3 %vm231_vm0, %v353_v0  ;;  %v354_v43 = vadd.f32 %v660_v22, %v346_v40 }
  0xbb   : > { %v310_v39 = vmul.f32 %v670_v26, %v309_v38 }
  0xbd   : > { %v314_v5 = vsel %vm313_vm13, %v670_v26, %v310_v39 }
  0xbe   : > { %v336_v42 = vmul.f32 %v314_v5, %v288_v41 }
  0xc0   : > { %v344_v44 = vmul.f32 %v659_v17, %v336_v42 }
  0xc2   : > { %556 = vmatmul.msk.f32.gmra.mxu2 %vm231_vm0, %v354_v43  ;;  %564 = vmatmul.msk.f32.gmra.mxu3 %vm231_vm0, %v354_v43  ;;  %v352_v45 = vadd.f32 %v660_v22, %v344_v44 }
  0xc4   : > { %554 = vmatmul.msk.f32.gmra.mxu0 %vm231_vm0, %v352_v45  ;;  %562 = vmatmul.msk.f32.gmra.mxu1 %vm231_vm0, %v352_v45 }
 0x131   : > { %v388_v46 = vpop.f32.mrf.mxu0  ;;  %v426_v11 = vpop.f32.mrf.mxu1 }
 0x132   : > { %400 = vst.msk [vmem:[%s215_s12] sm:$0xff] %vm231_vm0, %v388_v46 }
 0x133   : > { %565 = vst.msk [vmem:[%s215_s12 + $0x8] sm:$0xff] %vm231_vm0, %v426_v11 }
 0x13d   : > { %v394_v47 = vpop.f32.mrf.mxu2  ;;  %v432_v48 = vpop.f32.mrf.mxu3 }
 0x13e   : > { %402 = vst.msk [vmem:[%s215_s12 + $0x20] sm:$0xff] %vm231_vm0, %v394_v47 }
 0x13f   : > { %567 = vst.msk [vmem:[%s215_s12 + $0x28] sm:$0xff] %vm231_vm0, %v432_v48 }
 0x141   : > { %v391_v49 = vpop.f32.mrf.mxu0  ;;  %v429_v50 = vpop.f32.mrf.mxu1 }
 0x142   : > { %401 = vst.msk [vmem:[%s215_s12 + $0x10] sm:$0xff] %vm231_vm0, %v391_v49 }
 0x143   : > { %566 = vst.msk [vmem:[%s215_s12 + $0x18] sm:$0xff] %vm231_vm0, %v429_v50 }
 0x145   : > { %v397_v51 = vpop.f32.mrf.mxu2  ;;  %v435_v52 = vpop.f32.mrf.mxu3 }
 0x146   : > { %403 = vst.msk [vmem:[%s215_s12 + $0x30] sm:$0xff] %vm231_vm0, %v397_v51 }
 0x147   : > { %568 = vst.msk [vmem:[%s215_s12 + $0x38] sm:$0xff] %vm231_vm0, %v435_v52 }
 0x148   : > { %698 = shalt.err (!%p695_p7)
}
 0x149   : > { %s768_s10 = smov 128   ;;  %s769_s12 = smov 8  }
 0x14a   : > { %585 = dma.vmem_to_hbm [thread:$0]  (%p846_p3), %s460_s6, 1024, %s462_s8, %s444_s18, %s768_s10, %s768_s10, %s769_s12  }
 0x14b PF: > { %p591_p9 = scmp.ge.s32.totalorder %s765_s22, 2  ;;  %s476_s27 = sand.u32 1, %s737_s15  }
 0x14c   : > { %s477_s30 = scalar_lea.sflag [#allocation3], %s476_s27 }
 0x14d   : > { %p588_p10 = pnand %p591_p9, %p855_p8 }
 0x14f   : > { %p589_p11 = pneg %p588_p10 }
 0x151   : > { %732 = dma.done.wait (%p589_p11), %s477_s30, 1024  }
 0x152   : > { %734 = vsyncadd (%p589_p11), %s477_s30, 4294966272  ;;  %s17_s22 = sadd.s32 1, %s765_s22   ;;  %s1021_s15 = smov %s741_s16 }
 0x153   : > { %p14_p12 = scmp.ge.s32.totalorder %s17_s22, 6   ;;  %s1022_s16 = smov %s745_s17 }
 0x154   : > { %s1023_s17 = smov %s864_s7  ;;  %s1024_s18 = smov %s757_s20 }
 0x155   : > { %s1025_s19 = smov %s761_s21  ;;  %s1026_s20 = smov %s1029_s25 }
 0x156   : > { %s1027_s21 = smov %s1033_s26  ;;  %16 = sbr.rel (!%p14_p12) target bundleno = 5 (0x5), region = 73 }
 0x15b   :  { %483 = vsyncpa [#allocation3], 1 }
 0x15c   :  { %485 = vsyncpa [#allocation3 + $0x1], 1 }

// kernel: tpu_custom_call.1
= control target key start
LH: loop header
LB: loop body
LE: loop exit
PB: predicated region body
PF: predicated region fallthrough
CT: control target
= control target key end

     0   :  { %9 = vsyncpa [#allocation3], 0  ;;  %s1014_s0 = inlined_call_operand.vmem [shape: f32[2,64,32], index: 0, kind: input, shape index: {}]   ;;  %s1015_s1 = inlined_call_operand.vmem [shape: f32[2,32,32], index: 1, kind: input, shape index: {}]   ;;  %s1016_s2 = inlined_call_operand.vmem [shape: f32[1,32], index: 2, kind: input, shape index: {}]   ;;  %s1017_s3 = inlined_call_operand.vmem [shape: f32[1,32], index: 3, kind: input, shape index: {}]   ;;  %s1018_s4 = inlined_call_operand.hbm [shape: f32[2,8,2,8,32], index: 4, kind: output, shape index: {}]  }
   0x1   :  { %11 = vsyncpa [#allocation3 + $0x1], 0  ;;  %s795_s15 = smov 0   ;;  %s797_s16 = smov 0  }
   0x2   :  { %s799_s17 = smov 0   ;;  %s801_s18 = smov 0  }
   0x3   :  { %s803_s19 = smov 0   ;;  %s805_s20 = smov 0  }
   0x4   :  { %s807_s21 = smov 0   ;;  %s809_s22 = smov 0  }
   0x5 LB: > { %s544_s23 = sadd.s32 4294967295, %s765_s22   ;;  %s545_s24 = sadd.s32 4294967294, %s765_s22   ;;  %s765_s22 = sphi %s809_s22, %s17_s22   ;;  %s761_s21 = sphi %s807_s21, %s1027_s21   ;;  %s757_s20 = sphi %s805_s20, %s1026_s20   ;;  %s753_s19 = sphi %s803_s19, %s1025_s19   ;;  %s749_s18 = sphi %s801_s18, %s1024_s18   ;;  %s745_s17 = sphi %s799_s17, %s1023_s17   ;;  %s741_s16 = sphi %s797_s16, %s1022_s16   ;;  %s737_s15 = sphi %s795_s15, %s1021_s15  }
   0x6   : > { %s26_s25 = sadd.s32 1, %s757_s20  ;;  %s29_s26 = sadd.s32 1, %s761_s21 }
   0x7   : > { %p27_p0 = scmp.ge.s32.totalorder %s26_s25, 2  ;;  %p139_p1 = scmp.ne.s32.totalorder %s745_s17, %s741_s16 }
   0x8   : > { %p140_p2 = scmp.eq.s32.totalorder %s544_s23, 3  ;;  %p145_p5 = scmp.ne.s32.totalorder %s741_s16, %s737_s15 }
   0x9   : > { %s1029_s25 = smov (%p27_p0, %s26_s25), 0  ;;  %s1031_s26 = smov (!%p27_p0, %s29_s26), %s761_s21 }
   0xa   : > { %s125_s27 = ssub.s32 %s757_s20, %s1029_s25  ;;  %p846_p3 = por %p140_p2, %p139_p1 }
   0xb   : > { %p31_p4 = scmp.ge.s32.totalorder %s1031_s26, 2  ;;  %p146_p6 = scmp.eq.s32.totalorder %s545_s24, 3 }
   0xc   : > { %p548_p7 = scmp.ge.s32.totalorder %s765_s22, 1  ;;  %p186_p9 = scmp.lt.s32.totalorder %s765_s22, 5 }
   0xd   : > { %s1033_s26 = smov (%p31_p4, %s1031_s26), 0  ;;  %p855_p8 = por %p146_p6, %p145_p5 }
   0xe   : > { %s124_s30 = ssub.s32 %s761_s21, %s1033_s26  ;;  %s129_s5 = sadd.s32 1, %s745_s17 }
   0xf   : > { %s126_s6 = sor.u32 %s125_s27, %s124_s30  ;;  %p187_p10 = pnand %p548_p7, %p186_p9 }
  0x10   : > { %p127_p11 = scmp.eq.s32.totalorder %s126_s6, 0  ;;  %s550_s8 = sshll.u32 (!%p187_p10), %s749_s18, 2 }
  0x11   : > { %190 = sbr.rel (%p187_p10) target bundleno = 331 (0x14b), region = 36  ;;  %p217_p12 = scmp.lt.s32.totalorder (!%p187_p10), %s753_s19, 1 }
  0x12   : > { %s864_s7 = scalar_select %p127_p11, %s745_s17, %s129_s5  }
  0x13   : > { %p219_p13 = scmp.lt.s32.totalorder (!%p187_p10), %s550_s8, 7  ;;  %s576_s13 = sshll.u32 (!%p187_p10), %s749_s18, 3 }
  0x14   : > { %s572_s14 = sshll.u32 (!%p187_p10), %s753_s19, 4 }
  0x16   : > { %s218_s9 = scalar_select %p217_p12, %s753_s19, 1  ;;  %vm231_vm0 = vcmask 261120   ;;  %v767_v16 = vmov 32.0   ;;  %v358_v22 = vld [vmem:[%s1015_s1 + $0x18] sm:$0xff]  ;;  %v357_v25 = vld [vmem:[%s1015_s1 + $0x10] sm:$0xff]  ;;  %v356_v29 = vld [vmem:[%s1015_s1 + $0x8] sm:$0xff] }
  0x17   : > { %s1035_s8 = smov (!%p219_p13, %s550_s8), 7  ;;  %661 = vrcp.f32 %v767_v16  ;;  %v560_v23 = vld [vmem:[%s1015_s1 + $0x38] sm:$0xff]  ;;  %383 = vmatpush.msra.mxu0 %v358_v22  ;;  %v559_v26 = vld [vmem:[%s1015_s1 + $0x30] sm:$0xff]  ;;  %577 = vmatpush.msra.mxu2 %v358_v22  ;;  %v558_v30 = vld [vmem:[%s1015_s1 + $0x28] sm:$0xff] }
  0x18   : > { %s551_s10 = sshll.u32 %s218_s9, 3  ;;  %421 = vmatpush.msra.mxu1 %v560_v23  ;;  %581 = vmatpush.msra.mxu3 %v560_v23  ;;  %v355_v33 = vld [vmem:[%s1015_s1] sm:$0xff] }
  0x19   : > { %s222_s11 = sadd.s32 %s551_s10, %s1035_s8  ;;  %384 = vmatpush.msra.mxu0 %v357_v25  ;;  %578 = vmatpush.msra.mxu2 %v357_v25  ;;  %v557_v34 = vld [vmem:[%s1015_s1 + $0x20] sm:$0xff]  ;;  %s213_s10 = sand.u32 1, %s741_s16  }
  0x1a   : > { %s552_s12 = sshll.u32 %s222_s11, 3  ;;  %422 = vmatpush.msra.mxu1 %v559_v26  ;;  %582 = vmatpush.msra.mxu3 %v559_v26  ;;  %v660_v22 = vld [vmem:[%s1017_s3] ss:$0 sm:$0xff]  ;;  %s549_s11 = sshll.u32 %s213_s10, 6 }
  0x1b   : > { %s224_s23 = scalar_lea.vmem %s1014_s0, %s552_s12  ;;  %385 = vmatpush.msra.mxu0 %v356_v29  ;;  %579 = vmatpush.msra.mxu2 %v356_v29  ;;  %s215_s12 = scalar_lea.vmem [#allocation2], %s549_s11 }
  0x1c   : > { %v872_v0 = vld [vmem:[%s224_s23 + $0x10] sm:$0xff]  ;;  %v874_v1 = vld [vmem:[%s224_s23] sm:$0xff]  ;;  %v882_v5 = vld [vmem:[%s224_s23 + $0x18] sm:$0xff]  ;;  %423 = vmatpush.msra.mxu1 %v558_v30  ;;  %583 = vmatpush.msra.mxu3 %v558_v30  ;;  %s459_s6 = sshll.u32 %s215_s12, 4  ;;  %s444_s18 = scalar_lea.sflag [#allocation3], %s213_s10  ;;  %s460_s6 = int_to_ptr.vmem [resolvable:$true] %s459_s6 }
  0x1d   : > { %v238_v2 = vsel %vm231_vm0, %v872_v0, 0.0  ;;  %v232_v3 = vsel %vm231_vm0, %v874_v1, 0.0  ;;  %v255_v4 = vmul.f32 %v874_v1, %v874_v1  ;;  %v257_v7 = vmul.f32 %v872_v0, %v872_v0  ;;  %v892_v11 = vld [vmem:[%s224_s23 + $0x8] sm:$0xff]  ;;  %v662_v17 = vpop.eup %661  ;;  %386 = vmatpush.msra.mxu0 %v355_v33  ;;  %580 = vmatpush.msra.mxu2 %v355_v33  ;;  %s456_s23 = sadd.s32 %s576_s13, %s572_s14  ;;  %s691_s14 = scalar_lea.hbm %s1018_s4, 256 }
  0x1e   : > { %239 = vadd.xlane.f32.xlu0 %v238_v2  ;;  %233 = vadd.xlane.f32.xlu1 %v232_v3  ;;  %v258_v8 = vmul.f32 %v882_v5, %v882_v5  ;;  %v241_v10 = vsel %vm231_vm0, %v882_v5, 0.0  ;;  %v256_v13 = vmul.f32 %v892_v11, %v892_v11  ;;  %v235_v14 = vsel %vm231_vm0, %v892_v11, 0.0  ;;  %s573_s24 = sshll.u32 %s456_s23, 3 }
  0x1f   : > { %v259_v6 = vsel %vm231_vm0, %v255_v4, 0.0  ;;  %v265_v9 = vsel %vm231_vm0, %v257_v7, 0.0  ;;  %v245_v18 = vmul.f32 32.0, %v662_v17  ;;  %vm249_vm1 = vweird.f32 %v662_v17  ;;  %424 = vmatpush.msra.mxu1 %v557_v34  ;;  %584 = vmatpush.msra.mxu3 %v557_v34  ;;  %s458_s5 = scalar_lea.hbm %s1018_s4, %s573_s24 }
  0x20   : > { %260 = vadd.xlane.f32.xlu2 %v259_v6  ;;  %v268_v12 = vsel %vm231_vm0, %v258_v8, 0.0  ;;  %v262_v15 = vsel %vm231_vm0, %v256_v13, 0.0  ;;  %s461_s8 = sshll.u32 %s458_s5, 4  ;;  %s462_s8 = int_to_ptr.hbm [resolvable:$true] %s461_s8 }
  0x21   : > { %v246_v19 = vsub.f32 1.0, %v245_v18  ;;  %s685_s19 = sshra.s32 %s462_s8, 4  ;;  %s686_s19 = int_to_ptr.hbm [resolvable:$true] %s685_s19 }
  0x22   : > { %s687_s9 = scalar_lea.hbm %s686_s19, 64  ;;  %p692_p4 = scmp.lt.s32.totalorder %s686_s19, %s1018_s4 }
  0x23   : > { %v247_v20 = vmul.f32 %v662_v17, %v246_v19  ;;  %p688_p0 = scmp.ne.s32.totalorder %s686_s19, %s687_s9  ;;  %p693_p5 = scmp.lt.s32.totalorder %s691_s14, %s687_s9 }
  0x25   : > { %v248_v21 = vadd.f32 %v662_v17, %v247_v20  ;;  %p689_p1 = pnand %p688_p0, %p846_p3  ;;  %p694_p6 = por %p693_p5, %p692_p4 }
  0x26   : > { %266 = vadd.xlane.f32.xlu0 %v265_v9  ;;  %242 = vadd.xlane.f32.xlu1 %v241_v10 }
  0x27   : > { %v250_v24 = vsel %vm249_vm1, %v662_v17, %v248_v21  ;;  %v659_v17 = vld [vmem:[%s1016_s2] ss:$0 sm:$0xff]  ;;  %p690_p2 = pneg %p689_p1 }
  0x28   : > { %269 = vadd.xlane.f32.xlu2 %v268_v12 }
  0x29   : > { %p695_p7 = pnand %p694_p6, %p690_p2 }
  0x2e   : > { %236 = vadd.xlane.f32.xlu0 %v235_v14  ;;  %263 = vadd.xlane.f32.xlu1 %v262_v15 }
  0x91   : > { %v240_v27 = vpop.xlane.xlu0 %239  ;;  %v234_v28 = vpop.xlane.xlu1 %233 }
  0x92   : > { %v918_v31 = vmul.f32 %v250_v24, %v234_v28  ;;  %v928_v37 = vmul.f32 %v250_v24, %v240_v27 }
  0x93   : > { %v261_v32 = vpop.xlane.xlu2 %260 }
  0x94   : > { %v275_v35 = vmul.f32 %v918_v31, %v918_v31  ;;  %v271_v36 = vmul.f32 %v261_v32, %v250_v24  ;;  %v277_v42 = vmul.f32 %v928_v37, %v928_v37  ;;  %v287_v14 = vsub.f32 %v874_v1, %v918_v31 }
  0x95   : > { %v289_v25 = vsub.f32 %v872_v0, %v928_v37 }
  0x96   : > { %v279_v38 = vsub.f32 %v271_v36, %v275_v35 }
  0x98   : > { %v283_v39 = vmax.f32 %v279_v38, 0.0 }
  0x99   : > { %v267_v40 = vpop.xlane.xlu0 %266  ;;  %v243_v41 = vpop.xlane.xlu1 %242 }
  0x9a   : > { %v273_v43 = vmul.f32 %v267_v40, %v250_v24  ;;  %v932_v44 = vmul.f32 %v250_v24, %v243_v41  ;;  %v291_v45 = vadd.f32 1e-05, %v283_v39 }
  0x9b   : > { %v270_v46 = vpop.xlane.xlu2 %269 }
  0x9c   : > { %v281_v47 = vsub.f32 %v273_v43, %v277_v42  ;;  %v278_v48 = vmul.f32 %v932_v44, %v932_v44  ;;  %v274_v49 = vmul.f32 %v270_v46, %v250_v24  ;;  %663 = vrsqrt.f32 %v291_v45 }
  0x9d   : > { %vm301_vm2 = vweird.f32 %v291_v45  ;;  %v290_v33 = vsub.f32 %v882_v5, %v932_v44 }
  0x9e   : > { %v285_v50 = vmax.f32 %v281_v47, 0.0  ;;  %v282_v51 = vsub.f32 %v274_v49, %v278_v48 }
  0xa0   : > { %v293_v52 = vadd.f32 1e-05, %v285_v50  ;;  %v286_v53 = vmax.f32 %v282_v51, 0.0 }
  0xa1   : > { %v237_v54 = vpop.xlane.xlu0 %236  ;;  %v264_v55 = vpop.xlane.xlu1 %263 }
  0xa2   : > { %665 = vrsqrt.f32 %v293_v52  ;;  %v294_v56 = vadd.f32 1e-05, %v286_v53  ;;  %v936_v57 = vmul.f32 %v250_v24, %v237_v54  ;;  %v664_v58 = vpop.eup %663  ;;  %v272_v59 = vmul.f32 %v264_v55, %v250_v24 }
  0xa3   : > { %v296_v60 = vmul.f32 %v664_v58, %v291_v45  ;;  %vm302_vm3 = vweird.f32 %v664_v58  ;;  %vm321_vm6 = vweird.f32 %v293_v52 }
  0xa4   : > { %667 = vrsqrt.f32 %v294_v56  ;;  %v276_v61 = vmul.f32 %v936_v57, %v936_v57  ;;  %vm303_vm4 = vmor %vm301_vm2, %vm302_vm3  ;;  %vm331_vm7 = vweird.f32 %v294_v56  ;;  %v288_v41 = vsub.f32 %v892_v11, %v936_v57 }
  0xa5   : > { %v297_v62 = vmul.f32 %v664_v58, %v296_v60 }
  0xa6   : > { %v280_v63 = vsub.f32 %v272_v59, %v276_v61 }
  0xa7   : > { %v298_v3 = vmul.f32 0.5, %v297_v62 }
  0xa8   : > { %v666_v2 = vpop.eup %665  ;;  %v284_v6 = vmax.f32 %v280_v63, 0.0 }
  0xa9   : > { %v316_v4 = vmul.f32 %v666_v2, %v293_v52  ;;  %v299_v8 = vsub.f32 1.5, %v298_v3  ;;  %vm322_vm5 = vweird.f32 %v666_v2 }
  0xaa   : > { %v668_v7 = vpop.eup %667  ;;  %v292_v12 = vadd.f32 1e-05, %v284_v6  ;;  %vm323_vm9 = vmor %vm321_vm6, %vm322_vm5 }
  0xab   : > { %v317_v9 = vmul.f32 %v666_v2, %v316_v4  ;;  %v326_v10 = vmul.f32 %v668_v7, %v294_v56  ;;  %v300_v13 = vmul.f32 %v664_v58, %v299_v8  ;;  %vm332_vm8 = vweird.f32 %v668_v7 }
  0xac   : > { %669 = vrsqrt.f32 %v292_v12  ;;  %vm333_vm10 = vmor %vm331_vm7, %vm332_vm8  ;;  %vm311_vm12 = vweird.f32 %v292_v12 }
  0xad   : > { %v318_v15 = vmul.f32 0.5, %v317_v9  ;;  %v327_v16 = vmul.f32 %v668_v7, %v326_v10  ;;  %v304_v18 = vsel %vm303_vm4, %v664_v58, %v300_v13 }
  0xae   : > { %v335_v21 = vmul.f32 %v304_v18, %v287_v14 }
  0xaf   : > { %v319_v19 = vsub.f32 1.5, %v318_v15  ;;  %v328_v20 = vmul.f32 0.5, %v327_v16 }
  0xb0   : > { %v343_v24 = vmul.f32 %v659_v17, %v335_v21 }
  0xb1   : > { %v320_v1 = vmul.f32 %v666_v2, %v319_v19  ;;  %v329_v23 = vsub.f32 1.5, %v328_v20 }
  0xb2   : > { %v670_v26 = vpop.eup %669  ;;  %v351_v28 = vadd.f32 %v660_v22, %v343_v24 }
  0xb3   : > { %v330_v27 = vmul.f32 %v668_v7, %v329_v23  ;;  %v324_v29 = vsel %vm323_vm9, %v666_v2, %v320_v1  ;;  %v306_v30 = vmul.f32 %v670_v26, %v292_v12  ;;  %vm312_vm11 = vweird.f32 %v670_v26 }
  0xb4   : > { %v337_v31 = vmul.f32 %v324_v29, %v289_v25  ;;  %553 = vmatmul.msk.f32.vlgmr.msra.gmra.mxu0 %vm231_vm0, %v351_v28  ;;  %561 = vmatmul.msk.f32.vlgmr.msra.gmra.mxu1 %vm231_vm0, %v351_v28  ;;  %vm313_vm13 = vmor %vm311_vm12, %vm312_vm11 }
  0xb5   : > { %v334_v32 = vsel %vm333_vm10, %v668_v7, %v330_v27  ;;  %v307_v34 = vmul.f32 %v670_v26, %v306_v30 }
  0xb6   : > { %v345_v35 = vmul.f32 %v659_v17, %v337_v31  ;;  %v338_v37 = vmul.f32 %v334_v32, %v290_v33 }
  0xb7   : > { %v308_v36 = vmul.f32 0.5, %v307_v34 }
  0xb8   : > { %v353_v0 = vadd.f32 %v660_v22, %v345_v35  ;;  %v346_v40 = vmul.f32 %v659_v17, %v338_v37 }
  0xb9   : > { %v309_v38 = vsub.f32 1.5, %v308_v36 }
  0xba   : > { %555 = vmatmul.msk.f32.vlgmr.msra.gmra.mxu2 %vm231_vm0, %v353_v0  ;;  %563 = vmatmul.msk.f32.vlgmr.msra.gmra.mxu3 %vm231_vm0, %v353_v0  ;;  %v354_v43 = vadd.f32 %v660_v22, %v346_v40 }
  0xbb   : > { %v310_v39 = vmul.f32 %v670_v26, %v309_v38 }
  0xbd   : > { %v314_v5 = vsel %vm313_vm13, %v670_v26, %v310_v39 }
  0xbe   : > { %v336_v42 = vmul.f32 %v314_v5, %v288_v41 }
  0xc0   : > { %v344_v44 = vmul.f32 %v659_v17, %v336_v42 }
  0xc2   : > { %556 = vmatmul.msk.f32.gmra.mxu2 %vm231_vm0, %v354_v43  ;;  %564 = vmatmul.msk.f32.gmra.mxu3 %vm231_vm0, %v354_v43  ;;  %v352_v45 = vadd.f32 %v660_v22, %v344_v44 }
  0xc4   : > { %554 = vmatmul.msk.f32.gmra.mxu0 %vm231_vm0, %v352_v45  ;;  %562 = vmatmul.msk.f32.gmra.mxu1 %vm231_vm0, %v352_v45 }
 0x131   : > { %v388_v46 = vpop.f32.mrf.mxu0  ;;  %v426_v11 = vpop.f32.mrf.mxu1 }
 0x132   : > { %400 = vst.msk [vmem:[%s215_s12] sm:$0xff] %vm231_vm0, %v388_v46 }
 0x133   : > { %565 = vst.msk [vmem:[%s215_s12 + $0x8] sm:$0xff] %vm231_vm0, %v426_v11 }
 0x13d   : > { %v394_v47 = vpop.f32.mrf.mxu2  ;;  %v432_v48 = vpop.f32.mrf.mxu3 }
 0x13e   : > { %402 = vst.msk [vmem:[%s215_s12 + $0x20] sm:$0xff] %vm231_vm0, %v394_v47 }
 0x13f   : > { %567 = vst.msk [vmem:[%s215_s12 + $0x28] sm:$0xff] %vm231_vm0, %v432_v48 }
 0x141   : > { %v391_v49 = vpop.f32.mrf.mxu0  ;;  %v429_v50 = vpop.f32.mrf.mxu1 }
 0x142   : > { %401 = vst.msk [vmem:[%s215_s12 + $0x10] sm:$0xff] %vm231_vm0, %v391_v49 }
 0x143   : > { %566 = vst.msk [vmem:[%s215_s12 + $0x18] sm:$0xff] %vm231_vm0, %v429_v50 }
 0x145   : > { %v397_v51 = vpop.f32.mrf.mxu2  ;;  %v435_v52 = vpop.f32.mrf.mxu3 }
 0x146   : > { %403 = vst.msk [vmem:[%s215_s12 + $0x30] sm:$0xff] %vm231_vm0, %v397_v51 }
 0x147   : > { %568 = vst.msk [vmem:[%s215_s12 + $0x38] sm:$0xff] %vm231_vm0, %v435_v52 }
 0x148   : > { %698 = shalt.err (!%p695_p7)
}
 0x149   : > { %s768_s10 = smov 128   ;;  %s769_s12 = smov 8  }
 0x14a   : > { %585 = dma.vmem_to_hbm [thread:$0]  (%p846_p3), %s460_s6, 1024, %s462_s8, %s444_s18, %s768_s10, %s768_s10, %s769_s12  }
 0x14b PF: > { %p591_p9 = scmp.ge.s32.totalorder %s765_s22, 2  ;;  %s476_s27 = sand.u32 1, %s737_s15  }
 0x14c   : > { %s477_s30 = scalar_lea.sflag [#allocation3], %s476_s27 }
 0x14d   : > { %p588_p10 = pnand %p591_p9, %p855_p8 }
 0x14f   : > { %p589_p11 = pneg %p588_p10 }
 0x151   : > { %732 = dma.done.wait (%p589_p11), %s477_s30, 1024  }
 0x152   : > { %734 = vsyncadd (%p589_p11), %s477_s30, 4294966272  ;;  %s17_s22 = sadd.s32 1, %s765_s22   ;;  %s1021_s15 = smov %s741_s16 }
 0x153   : > { %p14_p12 = scmp.ge.s32.totalorder %s17_s22, 6   ;;  %s1022_s16 = smov %s745_s17 }
 0x154   : > { %s1023_s17 = smov %s864_s7  ;;  %s1024_s18 = smov %s757_s20 }
 0x155   : > { %s1025_s19 = smov %s761_s21  ;;  %s1026_s20 = smov %s1029_s25 }
 0x156   : > { %s1027_s21 = smov %s1033_s26  ;;  %16 = sbr.rel (!%p14_p12) target bundleno = 5 (0x5), region = 73 }
 0x15b   :  { %483 = vsyncpa [#allocation3], 1 }
 0x15c   :  { %485 = vsyncpa [#allocation3 + $0x1], 1 }

</bundles_post_ra>
